<compile_context>
chip_gen: v6e
topology: v6e:2x2x1
jax: 0.10.0
libtpu: 0.0.40
codegen_flags: <defaults>
</compile_context>

<pallas_src>
import jax
import jax.numpy as jnp
from jax.experimental import pallas as pl
from jax.experimental.pallas import tpu as pltpu


def _silu(x):
    # SiLU in f32; the logistic goes to the EUP slot.
    return x * jax.nn.sigmoid(x)


def actor_critic_kernel(obs_ref, w0, b0, w1, b1, w2, b2, w3, b3, out_ref):
    # obs tile [TB, obs]; cast only the MXU operands to bf16, accumulate f32.
    x = obs_ref[...].astype(jnp.bfloat16)
    h = jnp.dot(x, w0[...], preferred_element_type=jnp.float32) + b0[...]
    h = _silu(h)
    h = jnp.dot(h.astype(jnp.bfloat16), w1[...],
                preferred_element_type=jnp.float32) + b1[...]
    h = _silu(h)
    h = jnp.dot(h.astype(jnp.bfloat16), w2[...],
                preferred_element_type=jnp.float32) + b2[...]
    h = _silu(h)
    out = jnp.dot(h.astype(jnp.bfloat16), w3[...],
                  preferred_element_type=jnp.float32) + b3[...]
    out_ref[...] = out.astype(out_ref.dtype)   # lane-dense [TB, OUT_PAD] store


def init_params(key, obs_size, hidden_size, n_actions):
    """Deterministic PyTorch-style init. Weights stored as [in, out] (W.T)."""
    dims_actor = [(obs_size, hidden_size), (hidden_size, hidden_size),
                  (hidden_size, hidden_size), (hidden_size, n_actions)]
    dims_critic = [(obs_size, hidden_size), (hidden_size, hidden_size),
                   (hidden_size, hidden_size), (hidden_size, 1)]
    params = {}
    keys = jax.random.split(key, 16)
    ki = 0
    for i, (fin, fout) in enumerate(dims_actor):
        scale = 1.0 / jnp.sqrt(jnp.float32(fin))
        params[f"aw{i}"] = jax.random.uniform(
            keys[ki], (fin, fout), jnp.float32, -scale, scale); ki += 1
        params[f"ab{i}"] = jax.random.uniform(
            keys[ki], (1, fout), jnp.float32, -scale, scale); ki += 1
    for i, (fin, fout) in enumerate(dims_critic):
        scale = 1.0 / jnp.sqrt(jnp.float32(fin))
        params[f"cw{i}"] = jax.random.uniform(
            keys[ki], (fin, fout), jnp.float32, -scale, scale); ki += 1
        params[f"cb{i}"] = jax.random.uniform(
            keys[ki], (1, fout), jnp.float32, -scale, scale); ki += 1
    return params


def pack_params(params, obs_size, hidden_size, n_actions):
    """Fuse actor+critic into one chain; bf16 weights, f32 biases.

    w0: [obs, 2H] = [aw0 | cw0]         b0: [1, 2H]
    w1: [2H, 2H]  = blkdiag(aw1, cw1)   b1: [1, 2H]
    w2: [2H, 2H]  = blkdiag(aw2, cw2)   b2: [1, 2H]
    w3: [2H, OUT_PAD], cols [0:n_actions]=actor head, col n_actions=critic head
    """
    H = hidden_size
    out_pad = pl.cdiv(n_actions + 1, 128) * 128
    z = jnp.zeros((H, H), jnp.float32)

    w0 = jnp.concatenate([params["aw0"], params["cw0"]], axis=1)
    b0 = jnp.concatenate([params["ab0"], params["cb0"]], axis=1)
    w1 = jnp.block([[params["aw1"], z], [z, params["cw1"]]])
    b1 = jnp.concatenate([params["ab1"], params["cb1"]], axis=1)
    w2 = jnp.block([[params["aw2"], z], [z, params["cw2"]]])
    b2 = jnp.concatenate([params["ab2"], params["cb2"]], axis=1)

    w3 = jnp.zeros((2 * H, out_pad), jnp.float32)
    w3 = w3.at[:H, :n_actions].set(params["aw3"])
    w3 = w3.at[H:, n_actions:n_actions + 1].set(params["cw3"])
    b3 = jnp.zeros((1, out_pad), jnp.float32)
    b3 = b3.at[:, :n_actions].set(params["ab3"])
    b3 = b3.at[:, n_actions:n_actions + 1].set(params["cb3"])

    packed = {
        "w0": w0.astype(jnp.bfloat16), "b0": b0,
        "w1": w1.astype(jnp.bfloat16), "b1": b1,
        "w2": w2.astype(jnp.bfloat16), "b2": b2,
        "w3": w3.astype(jnp.bfloat16), "b3": b3,
    }
    return packed, out_pad


def _choose_batch_tile(batch, obs_size, out_pad, max_rows=1024):
    """Largest sublane-aligned batch tile whose double-buffered streaming
    tiles stay under ~16 MiB (safe for v7x's 32 MiB scoped-VMEM default)."""
    tb = min(max_rows, pl.cdiv(batch, 8) * 8)
    budget = 16 * 1024 * 1024
    per_row = 2 * 4 * (obs_size + out_pad)   # double-buffered f32 obs + out
    while tb > 8 and tb * per_row > budget:
        tb //= 2
    return max(8, (tb // 8) * 8)


def actor_critic_forward(obs, packed, n_actions, *, max_tile_rows=1024):
    """obs: [B, obs_size] f32 (or bf16). Returns (pi_logits [B, n_actions], v [B])."""
    B, obs_size = obs.shape
    out_pad = packed["w3"].shape[1]
    H2 = packed["w1"].shape[0]

    tb = _choose_batch_tile(B, obs_size, out_pad, max_tile_rows)
    b_pad = pl.cdiv(B, tb) * tb
    if b_pad != B:
        obs = jnp.pad(obs, ((0, b_pad - B), (0, 0)))
    grid = (b_pad // tb,)

    weights = [packed[k] for k in ("w0", "b0", "w1", "b1", "w2", "b2", "w3", "b3")]
    # Weights/biases stay VMEM-resident across grid steps (constant index_map).
    resident_specs = [pl.BlockSpec(w.shape, lambda i: (0, 0)) for w in weights]

    flops = 2 * b_pad * (obs_size * H2 + 2 * H2 * H2 + H2 * out_pad)
    transcendentals = 3 * b_pad * H2
    bytes_accessed = (obs.size * obs.dtype.itemsize
                      + 4 * b_pad * out_pad
                      + sum(int(w.size) * w.dtype.itemsize for w in weights))

    out = pl.pallas_call(
        actor_critic_kernel,
        out_shape=jax.ShapeDtypeStruct((b_pad, out_pad), jnp.float32),
        grid=grid,
        in_specs=[pl.BlockSpec((tb, obs_size), lambda i: (i, 0))] + resident_specs,
        out_specs=pl.BlockSpec((tb, out_pad), lambda i: (i, 0)),
        compiler_params=pltpu.CompilerParams(
            dimension_semantics=("parallel",)),
        cost_estimate=pl.CostEstimate(
            flops=int(flops),
            transcendentals=int(transcendentals),
            bytes_accessed=int(bytes_accessed)),
    )(obs, *weights)

    out = out[:B]
    logits = out[:, :n_actions]   # Categorical(logits=pi_logits) -> raw logits
    v = out[:, n_actions]         # critic(obs).squeeze(-1)
    return logits, v


def _reference_forward(obs, params, *, bf16_matmuls=False):
    """Pure-JAX reference. bf16_matmuls=True mirrors the kernel's mixed precision."""
    cast = (lambda z: z.astype(jnp.bfloat16)) if bf16_matmuls else (lambda z: z)

    def lin(x, w, b):
        return jnp.dot(cast(x), cast(w), preferred_element_type=jnp.float32) + b

    def silu(z):
        return z * jax.nn.sigmoid(z)

    h = silu(lin(obs, params["aw0"], params["ab0"]))
    h = silu(lin(h, params["aw1"], params["ab1"]))
    h = silu(lin(h, params["aw2"], params["ab2"]))
    logits = lin(h, params["aw3"], params["ab3"])
    g = silu(lin(obs, params["cw0"], params["cb0"]))
    g = silu(lin(g, params["cw1"], params["cb1"]))
    g = silu(lin(g, params["cw2"], params["cb2"]))
    v = lin(g, params["cw3"], params["cb3"])[:, 0]
    return logits, v


if __name__ == "__main__":
    B, OBS, HIDDEN, NACT = 8, 16, 32, 8

    key = jax.random.PRNGKey(0)
    k_obs, k_params = jax.random.split(key)
    obs = jax.random.normal(k_obs, (B, OBS), jnp.float32)
    params = init_params(k_params, OBS, HIDDEN, NACT)
    packed, _ = pack_params(params, OBS, HIDDEN, NACT)

    # TODO(synk): torch.distributions.Categorical has no Pallas equivalent;
    # the kernel returns the raw actor logits that parameterize it.
    logits, v = actor_critic_forward(obs, packed, NACT)
    jax.block_until_ready((logits, v))

    assert logits.shape == (B, NACT) and v.shape == (B,)

    # Tight check vs a reference mirroring the kernel's bf16-operand / f32-acc math.
    ref_l_bf, ref_v_bf = _reference_forward(obs, params, bf16_matmuls=True)
    assert jnp.allclose(logits, ref_l_bf, atol=2e-3, rtol=2e-3)
    assert jnp.allclose(v, ref_v_bf, atol=2e-3, rtol=2e-3)

    # Loose check vs the pure-f32 (PyTorch-semantics) reference.
    ref_l, ref_v = _reference_forward(obs, params)
    assert jnp.allclose(logits, ref_l, atol=5e-2, rtol=5e-2)
    assert jnp.allclose(v, ref_v, atol=5e-2, rtol=5e-2)

    print("KERNEL_OK")
</pallas_src>

<mosaic_0001>
module attributes {stable_mosaic.version = 11 : i64} {
  func.func @actor_critic_kernel(%arg0: i32, %arg1: memref<8x16xf32, #tpu.memory_space<vmem>>, %arg2: memref<16x64xbf16, #tpu.memory_space<vmem>>, %arg3: memref<1x64xf32, #tpu.memory_space<vmem>>, %arg4: memref<64x64xbf16, #tpu.memory_space<vmem>>, %arg5: memref<1x64xf32, #tpu.memory_space<vmem>>, %arg6: memref<64x64xbf16, #tpu.memory_space<vmem>>, %arg7: memref<1x64xf32, #tpu.memory_space<vmem>>, %arg8: memref<64x128xbf16, #tpu.memory_space<vmem>>, %arg9: memref<1x128xf32, #tpu.memory_space<vmem>>, %arg10: memref<8x128xf32, #tpu.memory_space<vmem>>) attributes {dimension_semantics = [#tpu.dimension_semantics<parallel>], iteration_bounds = array<i64: 1>, scalar_prefetch = 0 : i64, scratch_operands = 0 : i64, tpu.core_type = #tpu.core_type<tc>, window_params = [{transform_indices = @transform_0, window_bounds = array<i64: 8, 16>}, {pipeline_mode = #tpu.pipeline_mode<synchronous>, transform_indices = @transform_1, window_bounds = array<i64: 16, 64>}, {pipeline_mode = #tpu.pipeline_mode<synchronous>, transform_indices = @transform_2, window_bounds = array<i64: 1, 64>}, {pipeline_mode = #tpu.pipeline_mode<synchronous>, transform_indices = @transform_3, window_bounds = array<i64: 64, 64>}, {pipeline_mode = #tpu.pipeline_mode<synchronous>, transform_indices = @transform_4, window_bounds = array<i64: 1, 64>}, {pipeline_mode = #tpu.pipeline_mode<synchronous>, transform_indices = @transform_5, window_bounds = array<i64: 64, 64>}, {pipeline_mode = #tpu.pipeline_mode<synchronous>, transform_indices = @transform_6, window_bounds = array<i64: 1, 64>}, {pipeline_mode = #tpu.pipeline_mode<synchronous>, transform_indices = @transform_7, window_bounds = array<i64: 64, 128>}, {pipeline_mode = #tpu.pipeline_mode<synchronous>, transform_indices = @transform_8, window_bounds = array<i64: 1, 128>}, {transform_indices = @transform_9, window_bounds = array<i64: 8, 128>}]} {
    %c0 = arith.constant 0 : index
    %c0_0 = arith.constant 0 : index
    %0 = vector.load %arg1[%c0, %c0_0] : memref<8x16xf32, #tpu.memory_space<vmem>>, vector<8x16xf32>
    %1 = arith.truncf %0 : vector<8x16xf32> to vector<8x16xbf16>
    %c0_1 = arith.constant 0 : index
    %c0_2 = arith.constant 0 : index
    %2 = vector.load %arg2[%c0_1, %c0_2] : memref<16x64xbf16, #tpu.memory_space<vmem>>, vector<16x64xbf16>
    %cst = arith.constant dense<0.000000e+00> : vector<8x64xf32>
    %3 = tpu.matmul %1, %2, %cst {dimension_numbers = #tpu.dot_dimension_numbers<[1], [0], [0], [1], [0, 0, 1, 1], [], []>} : vector<8x16xbf16>, vector<16x64xbf16>, vector<8x64xf32> -> vector<8x64xf32>
    %c0_3 = arith.constant 0 : index
    %c0_4 = arith.constant 0 : index
    %4 = vector.load %arg3[%c0_3, %c0_4] : memref<1x64xf32, #tpu.memory_space<vmem>>, vector<1x64xf32>
    %5 = vector.broadcast %4 : vector<1x64xf32> to vector<8x64xf32>
    %6 = arith.addf %3, %5 : vector<8x64xf32>
    %7 = arith.negf %6 : vector<8x64xf32>
    %8 = math.exp %7 : vector<8x64xf32>
    %cst_5 = arith.constant 1.000000e+00 : f32
    %9 = vector.broadcast %cst_5 : f32 to vector<8x64xf32>
    %10 = arith.addf %9, %8 : vector<8x64xf32>
    %11 = arith.divf %9, %10 : vector<8x64xf32>
    %12 = arith.mulf %6, %11 : vector<8x64xf32>
    %13 = arith.truncf %12 : vector<8x64xf32> to vector<8x64xbf16>
    %c0_6 = arith.constant 0 : index
    %c0_7 = arith.constant 0 : index
    %14 = vector.load %arg4[%c0_6, %c0_7] : memref<64x64xbf16, #tpu.memory_space<vmem>>, vector<64x64xbf16>
    %cst_8 = arith.constant dense<0.000000e+00> : vector<8x64xf32>
    %15 = tpu.matmul %13, %14, %cst_8 {dimension_numbers = #tpu.dot_dimension_numbers<[1], [0], [0], [1], [0, 0, 1, 1], [], []>} : vector<8x64xbf16>, vector<64x64xbf16>, vector<8x64xf32> -> vector<8x64xf32>
    %c0_9 = arith.constant 0 : index
    %c0_10 = arith.constant 0 : index
    %16 = vector.load %arg5[%c0_9, %c0_10] : memref<1x64xf32, #tpu.memory_space<vmem>>, vector<1x64xf32>
    %17 = vector.broadcast %16 : vector<1x64xf32> to vector<8x64xf32>
    %18 = arith.addf %15, %17 : vector<8x64xf32>
    %19 = arith.negf %18 : vector<8x64xf32>
    %20 = math.exp %19 : vector<8x64xf32>
    %cst_11 = arith.constant 1.000000e+00 : f32
    %21 = vector.broadcast %cst_11 : f32 to vector<8x64xf32>
    %22 = arith.addf %21, %20 : vector<8x64xf32>
    %23 = arith.divf %21, %22 : vector<8x64xf32>
    %24 = arith.mulf %18, %23 : vector<8x64xf32>
    %25 = arith.truncf %24 : vector<8x64xf32> to vector<8x64xbf16>
    %c0_12 = arith.constant 0 : index
    %c0_13 = arith.constant 0 : index
    %26 = vector.load %arg6[%c0_12, %c0_13] : memref<64x64xbf16, #tpu.memory_space<vmem>>, vector<64x64xbf16>
    %cst_14 = arith.constant dense<0.000000e+00> : vector<8x64xf32>
    %27 = tpu.matmul %25, %26, %cst_14 {dimension_numbers = #tpu.dot_dimension_numbers<[1], [0], [0], [1], [0, 0, 1, 1], [], []>} : vector<8x64xbf16>, vector<64x64xbf16>, vector<8x64xf32> -> vector<8x64xf32>
    %c0_15 = arith.constant 0 : index
    %c0_16 = arith.constant 0 : index
    %28 = vector.load %arg7[%c0_15, %c0_16] : memref<1x64xf32, #tpu.memory_space<vmem>>, vector<1x64xf32>
    %29 = vector.broadcast %28 : vector<1x64xf32> to vector<8x64xf32>
    %30 = arith.addf %27, %29 : vector<8x64xf32>
    %31 = arith.negf %30 : vector<8x64xf32>
    %32 = math.exp %31 : vector<8x64xf32>
    %cst_17 = arith.constant 1.000000e+00 : f32
    %33 = vector.broadcast %cst_17 : f32 to vector<8x64xf32>
    %34 = arith.addf %33, %32 : vector<8x64xf32>
    %35 = arith.divf %33, %34 : vector<8x64xf32>
    %36 = arith.mulf %30, %35 : vector<8x64xf32>
    %37 = arith.truncf %36 : vector<8x64xf32> to vector<8x64xbf16>
    %c0_18 = arith.constant 0 : index
    %c0_19 = arith.constant 0 : index
    %38 = vector.load %arg8[%c0_18, %c0_19] : memref<64x128xbf16, #tpu.memory_space<vmem>>, vector<64x128xbf16>
    %cst_20 = arith.constant dense<0.000000e+00> : vector<8x128xf32>
    %39 = tpu.matmul %37, %38, %cst_20 {dimension_numbers = #tpu.dot_dimension_numbers<[1], [0], [0], [1], [0, 0, 1, 1], [], []>} : vector<8x64xbf16>, vector<64x128xbf16>, vector<8x128xf32> -> vector<8x128xf32>
    %c0_21 = arith.constant 0 : index
    %c0_22 = arith.constant 0 : index
    %40 = vector.load %arg9[%c0_21, %c0_22] : memref<1x128xf32, #tpu.memory_space<vmem>>, vector<1x128xf32>
    %41 = vector.broadcast %40 : vector<1x128xf32> to vector<8x128xf32>
    %42 = arith.addf %39, %41 : vector<8x128xf32>
    %c0_23 = arith.constant 0 : index
    %c0_24 = arith.constant 0 : index
    %43 = vector.load %arg10[%c0_23, %c0_24] : memref<8x128xf32, #tpu.memory_space<vmem>>, vector<8x128xf32>
    tpu.vector_store %arg10[%c0_23, %c0_24], %42 {strides = array<i32>} : memref<8x128xf32, #tpu.memory_space<vmem>>, vector<8x128xf32>,
    return
  }
  func.func @transform_0(%arg0: i32) -> (i32, i32) {
    %c0_i32 = arith.constant 0 : i32
    %c0_i32_0 = arith.constant 0 : i32
    return %arg0, %c0_i32 : i32, i32
  }
  func.func @transform_1(%arg0: i32) -> (i32, i32) {
    %c0_i32 = arith.constant 0 : i32
    %c0_i32_0 = arith.constant 0 : i32
    %c0_i32_1 = arith.constant 0 : i32
    return %c0_i32, %c0_i32_0 : i32, i32
  }
  func.func @transform_2(%arg0: i32) -> (i32, i32) {
    %c0_i32 = arith.constant 0 : i32
    %c0_i32_0 = arith.constant 0 : i32
    %c0_i32_1 = arith.constant 0 : i32
    return %c0_i32, %c0_i32_0 : i32, i32
  }
  func.func @transform_3(%arg0: i32) -> (i32, i32) {
    %c0_i32 = arith.constant 0 : i32
    %c0_i32_0 = arith.constant 0 : i32
    %c0_i32_1 = arith.constant 0 : i32
    return %c0_i32, %c0_i32_0 : i32, i32
  }
  func.func @transform_4(%arg0: i32) -> (i32, i32) {
    %c0_i32 = arith.constant 0 : i32
    %c0_i32_0 = arith.constant 0 : i32
    %c0_i32_1 = arith.constant 0 : i32
    return %c0_i32, %c0_i32_0 : i32, i32
  }
  func.func @transform_5(%arg0: i32) -> (i32, i32) {
    %c0_i32 = arith.constant 0 : i32
    %c0_i32_0 = arith.constant 0 : i32
    %c0_i32_1 = arith.constant 0 : i32
    return %c0_i32, %c0_i32_0 : i32, i32
  }
  func.func @transform_6(%arg0: i32) -> (i32, i32) {
    %c0_i32 = arith.constant 0 : i32
    %c0_i32_0 = arith.constant 0 : i32
    %c0_i32_1 = arith.constant 0 : i32
    return %c0_i32, %c0_i32_0 : i32, i32
  }
  func.func @transform_7(%arg0: i32) -> (i32, i32) {
    %c0_i32 = arith.constant 0 : i32
    %c0_i32_0 = arith.constant 0 : i32
    %c0_i32_1 = arith.constant 0 : i32
    return %c0_i32, %c0_i32_0 : i32, i32
  }
  func.func @transform_8(%arg0: i32) -> (i32, i32) {
    %c0_i32 = arith.constant 0 : i32
    %c0_i32_0 = arith.constant 0 : i32
    %c0_i32_1 = arith.constant 0 : i32
    return %c0_i32, %c0_i32_0 : i32, i32
  }
  func.func @transform_9(%arg0: i32) -> (i32, i32) {
    %c0_i32 = arith.constant 0 : i32
    %c0_i32_0 = arith.constant 0 : i32
    return %arg0, %c0_i32 : i32, i32
  }
}

</mosaic_0001>

<bundles_post_ra>
// kernel: tpu_custom_call.1
= control target key start
LH: loop header
LB: loop body
LE: loop exit
PB: predicated region body
PF: predicated region fallthrough
CT: control target
= control target key end

     0   :  { %14 = vsyncpa [#allocation3], 0  ;;  %s822_s0 = inlined_call_operand.hbm [shape: f32[8,16], index: 0, kind: input, shape index: {}]   ;;  %s823_s1 = inlined_call_operand.hbm [shape: bf16[16,64], index: 1, kind: input, shape index: {}]   ;;  %s824_s2 = inlined_call_operand.vmem [shape: f32[1,64], index: 2, kind: input, shape index: {}]   ;;  %s825_s3 = inlined_call_operand.hbm [shape: bf16[64,64], index: 3, kind: input, shape index: {}]   ;;  %s826_s4 = inlined_call_operand.vmem [shape: f32[1,64], index: 4, kind: input, shape index: {}]   ;;  %s827_s5 = inlined_call_operand.hbm [shape: bf16[64,64], index: 5, kind: input, shape index: {}]   ;;  %s828_s6 = inlined_call_operand.vmem [shape: f32[1,64], index: 6, kind: input, shape index: {}]   ;;  %s829_s7 = inlined_call_operand.hbm [shape: bf16[64,128], index: 7, kind: input, shape index: {}]   ;;  %s830_s8 = inlined_call_operand.vmem [shape: f32[1,128], index: 8, kind: input, shape index: {}]   ;;  %s831_s9 = inlined_call_operand.hbm [shape: f32[8,128], index: 9, kind: output, shape index: {}]  }
   0x1   :  { %15 = vsyncpa [#allocation6], 0 }
   0x2   :  { %16 = vsyncpa [#allocation9], 0 }
   0x3   :  { %17 = vsyncpa [#allocation4], 0  ;;  %s696_s30 = smov [#allocation5]  }
   0x4   :  { %s33_s10 = sshll.u32 %s696_s30, 4  ;;  %s34_s10 = int_to_ptr.vmem [resolvable:$true] %s33_s10 }
   0x5   :  { %s576_s11 = scalar_lea.vmem %s34_s10, 128  ;;  %p581_p1 = scmp.lt.s32.totalorder %s34_s10, %s34_s10 }
   0x6   :  { %p577_p0 = scmp.ne.s32.totalorder %s34_s10, %s576_s11  ;;  %p582_p2 = scmp.lt.s32.totalorder %s576_s11, %s576_s11 }
   0x8   :  { %p583_p3 = por %p582_p2, %p581_p1 }
   0xa   :  { %p584_p4 = pnand %p583_p3, %p577_p0 }
   0xc   :  { %587 = shalt.err (!%p584_p4)
}
   0xd   :  { %s697_s12 = smov 64   ;;  %s698_s13 = smov 4  }
   0xe   :  { %39 = dma.hbm_to_vmem [thread:$0]  %s823_s1, 128, %s34_s10, [#allocation6], %s697_s12, %s697_s12, %s698_s13  }
   0xf   :  { %s699_s16 = smov [#allocation8]   ;;  %s700_s18 = smov [#allocation2]  }
  0x10   :  { %s61_s17 = sshll.u32 %s699_s16, 4  ;;  %s24_s19 = sshll.u32 %s700_s18, 4  ;;  %s62_s17 = int_to_ptr.vmem [resolvable:$true] %s61_s17  ;;  %s25_s19 = int_to_ptr.vmem [resolvable:$true] %s24_s19 }
  0x11   :  { %s596_s20 = scalar_lea.vmem %s62_s17, 512  ;;  %p601_p6 = scmp.lt.s32.totalorder %s62_s17, %s62_s17 }
  0x12   :  { %p597_p5 = scmp.ne.s32.totalorder %s62_s17, %s596_s20  ;;  %p602_p7 = scmp.lt.s32.totalorder %s596_s20, %s596_s20 }
  0x14   :  { %p603_p8 = por %p602_p7, %p601_p6 }
  0x16   :  { %p604_p9 = pnand %p603_p8, %p597_p5 }
  0x18   :  { %607 = shalt.err (!%p604_p9)
}
  0x19   :  { %67 = dma.hbm_to_vmem [thread:$0]  %s827_s5, 512, %s62_s17, [#allocation9], %s697_s12, %s697_s12, %s698_s13  }
  0x1a   :  { %s616_s1 = scalar_lea.vmem %s25_s19, 128  ;;  %p621_p11 = scmp.lt.s32.totalorder %s25_s19, %s25_s19 }
  0x1b   :  { %p617_p10 = scmp.ne.s32.totalorder %s25_s19, %s616_s1  ;;  %p622_p12 = scmp.lt.s32.totalorder %s616_s1, %s616_s1 }
  0x1d   :  { %p623_p13 = por %p622_p12, %p621_p11 }
  0x1f   :  { %p624_p0 = pnand %p623_p13, %p617_p10 }
  0x21   :  { %627 = shalt.err (!%p624_p0)
}
  0x22   :  { %27 = dma.hbm_to_vmem [thread:$0]  %s822_s0, 128, %s25_s19, [#allocation3]  }
  0x23   :  { %s701_s25 = smov [#allocation7]   ;;  %s702_s27 = smov [#allocation10]  }
  0x24   :  { %s47_s26 = sshll.u32 %s701_s25, 4  ;;  %s75_s28 = sshll.u32 %s702_s27, 4  ;;  %s48_s26 = int_to_ptr.vmem [resolvable:$true] %s47_s26  ;;  %s76_s28 = int_to_ptr.vmem [resolvable:$true] %s75_s28 }
  0x25   :  { %s636_s29 = scalar_lea.vmem %s48_s26, 512  ;;  %p641_p2 = scmp.lt.s32.totalorder %s48_s26, %s48_s26 }
  0x26   :  { %p637_p1 = scmp.ne.s32.totalorder %s48_s26, %s636_s29  ;;  %p642_p3 = scmp.lt.s32.totalorder %s636_s29, %s636_s29 }
  0x28   :  { %p643_p4 = por %p642_p3, %p641_p2 }
  0x2a   :  { %p644_p5 = pnand %p643_p4, %p637_p1 }
  0x2c   :  { %647 = shalt.err (!%p644_p5)
}
  0x2d   :  { %53 = dma.hbm_to_vmem [thread:$0]  %s825_s3, 512, %s48_s26, [#allocation6], %s697_s12, %s697_s12, %s698_s13  }
  0x2e   :  { %s656_s0 = scalar_lea.vmem %s76_s28, 512  ;;  %p661_p7 = scmp.lt.s32.totalorder %s76_s28, %s76_s28 }
  0x2f   :  { %p657_p6 = scmp.ne.s32.totalorder %s76_s28, %s656_s0  ;;  %p662_p8 = scmp.lt.s32.totalorder %s656_s0, %s656_s0 }
  0x31   :  { %p663_p9 = por %p662_p8, %p661_p7 }
  0x33   :  { %p664_p10 = pnand %p663_p9, %p657_p6 }
  0x35   :  { %667 = shalt.err (!%p664_p10)
}
  0x36   :  { %81 = dma.hbm_to_vmem [thread:$0]  %s829_s7, 512, %s76_s28, [#allocation9], %s697_s12, %s697_s12, %s698_s13  }
  0x37   :  { %688 = dma.done.wait [#allocation3], 128  }
  0x38   :  { %689 = vsyncadd [#allocation3], 4294967168 }
  0x39   :  { %690 = dma.done.wait [#allocation6], 640  }
  0x3a   :  { %691 = vsyncadd [#allocation6], 4294966656 }
  0x3b   :  { %692 = dma.done.wait [#allocation9], 1024  }
  0x3c   :  { %693 = vsyncadd [#allocation9], 4294966272  ;;  %v703_v0 = vmov 0.0   ;;  %vm704_vm0 = vmmov 0   ;;  %v543_v1 = vld [vmem:[#allocation5] sm:$0xff]   ;;  %v100_v2 = vld [vmem:[#allocation2] sm:$0xff] }
  0x3d   :  { %491 = vmatprep.subr.bf16.mxu0 %v703_v0  ;;  %493 = vmatprep.mubr.msk.bf16.mxu0 %vm704_vm0, %v703_v0  ;;  %vm117_vm1 = vcmask 130048   ;;  %v101_v3 = vpack.c.bf16 %v100_v2, %v100_v2  ;;  %v544_v4 = vld [vmem:[#allocation7 + $0x18] sm:$0xff]   ;;  %v545_v5 = vld [vmem:[#allocation7 + $0x10] sm:$0xff]   ;;  %v546_v6 = vld [vmem:[#allocation7 + $0x8] sm:$0xff]   ;;  %vm208_vm2 = vcmask 523264  }
  0x3e   :  { %497 = vmatprep.subr.bf16.mxu1 %v703_v0  ;;  %505 = vmatprep.mubr.msk.bf16.mxu1 %vm704_vm0, %v703_v0  ;;  %v547_v7 = vld [vmem:[#allocation7] sm:$0xff]   ;;  %v450_v8 = vld [vmem:[%s824_s2] ss:$0 sm:$0xff]  ;;  %v548_v20 = vld [vmem:[#allocation8 + $0x18] sm:$0xff]  }
  0x3f   :  { %492 = vmatpush3.bf16.msra.mxu0 %v543_v1  ;;  %498 = vmatpush3.bf16.msra.mxu1 %v544_v4  ;;  %v549_v21 = vld [vmem:[#allocation8 + $0x10] sm:$0xff]   ;;  %v550_v22 = vld [vmem:[#allocation8 + $0x8] sm:$0xff]   ;;  %v551_v23 = vld [vmem:[#allocation8] sm:$0xff]  }
  0x40   :  { %509 = vmatprep.subr.bf16.mxu0 %v703_v0  ;;  %499 = vmatprep.subr.bf16.mxu1 %v703_v0  ;;  %v454_v24 = vld [vmem:[%s826_s4] ss:$0 sm:$0xff]  ;;  %v552_v36 = vld [vmem:[#allocation10 + $0x18] sm:$0xff]   ;;  %v554_v38 = vld [vmem:[#allocation10 + $0x8] sm:$0xff]  }
  0x41   :  { %v553_v37 = vld [vmem:[#allocation10 + $0x10] sm:$0xff]   ;;  %v555_v39 = vld [vmem:[#allocation10] sm:$0xff]  }
  0x42   :  { %494 = vmatmul.mubr.msk.bf16.vlgmr.msra.gmra.mxu0 %vm117_vm1, %v101_v3  ;;  %v461_v40 = vld [vmem:[%s828_s6] ss:$0 sm:$0xff]  ;;  %s705_s6 = smov [#allocation11]  }
  0x43   :  { %517 = vmatprep.mubr.msk.bf16.mxu0 %vm704_vm0, %v703_v0  ;;  %500 = vmatpush3.bf16.msra.mxu1 %v545_v5  ;;  %v468_v52 = vld [vmem:[%s830_s8] ss:$0 sm:$0xff]  ;;  %s439_s16 = sshll.u32 %s705_s6, 4  ;;  %s440_s16 = int_to_ptr.vmem [resolvable:$true] %s439_s16 }
  0x44   :  { %501 = vmatprep.subr.bf16.mxu1 %v703_v0  ;;  %510 = vmatpush3.bf16.msra.mxu0 %v548_v20  ;;  %s668_s17 = scalar_lea.vmem %s440_s16, 128  ;;  %p673_p12 = scmp.lt.s32.totalorder %s440_s16, %s440_s16 }
  0x45   :  { %511 = vmatprep.subr.bf16.mxu0 %v703_v0  ;;  %p669_p11 = scmp.ne.s32.totalorder %s440_s16, %s668_s17  ;;  %p674_p13 = scmp.lt.s32.totalorder %s668_s17, %s668_s17 }
  0x47   :  { %502 = vmatpush3.bf16.msra.mxu1 %v546_v6  ;;  %p675_p0 = por %p674_p13, %p673_p12 }
  0x48   :  { %503 = vmatprep.subr.bf16.mxu1 %v703_v0  ;;  %512 = vmatpush3.bf16.msra.mxu0 %v549_v21 }
  0x49   :  { %513 = vmatprep.subr.bf16.mxu0 %v703_v0  ;;  %p676_p1 = pnand %p675_p0, %p669_p11 }
  0x4b   :  { %504 = vmatpush3.bf16.msra.mxu1 %v547_v7 }
  0x4c   :  { %521 = vmatprep.subr.bf16.mxu1 %v703_v0  ;;  %514 = vmatpush3.bf16.msra.mxu0 %v550_v22 }
  0x4d   :  { %515 = vmatprep.subr.bf16.mxu0 %v703_v0 }
  0x50   :  { %516 = vmatpush3.bf16.msra.mxu0 %v551_v23 }
 0x102   :  { %v155_v9 = vpop.f32.mrf.mxu0 }
 0x103   :  { %v156_v10 = vadd.f32 %v450_v8, %v155_v9 }
 0x104   :  { %v495_v11 = vpop.f32.mrf.mxu0 }
 0x105   :  { %v453_v12 = vmul.f32 -1.442695, %v156_v10 }
 0x106   :  { %v158_v13 = vpop.f32.mrf.mxu0 }
 0x107   :  { %556 = vpow2.f32 %v453_v12 }
 0x108   :  { %v496_v14 = vpop.f32.mrf.mxu0 }
 0x114   :  { %v557_v15 = vpop.eup %556 }
 0x115   :  { %v164_v16 = vadd.f32 1.0, %v557_v15 }
 0x117   :  { %558 = vrcp.f32 %v164_v16 }
 0x124   :  { %v559_v17 = vpop.eup %558 }
 0x125   :  { %v167_v18 = vmul.f32 %v559_v17, %v156_v10 }
 0x127   :  { %v168_v19 = vpack.c.bf16 %v167_v18, %v167_v18 }
 0x129   :  { %506 = vmatmul.mubr.msk.bf16.vlgmr.msra.gmra.mxu1 %vm208_vm2, %v168_v19 }
 0x12a   :  { %529 = vmatprep.mubr.msk.bf16.mxu1 %vm704_vm0, %v703_v0  ;;  %522 = vmatpush3.bf16.msra.mxu1 %v552_v36 }
 0x12b   :  { %523 = vmatprep.subr.bf16.mxu1 %v703_v0 }
 0x12e   :  { %524 = vmatpush3.bf16.msra.mxu1 %v553_v37 }
 0x12f   :  { %525 = vmatprep.subr.bf16.mxu1 %v703_v0 }
 0x132   :  { %526 = vmatpush3.bf16.msra.mxu1 %v554_v38 }
 0x133   :  { %527 = vmatprep.subr.bf16.mxu1 %v703_v0 }
 0x136   :  { %528 = vmatpush3.bf16.msra.mxu1 %v555_v39 }
 0x1e9   :  { %v246_v25 = vpop.f32.mrf.mxu1 }
 0x1ea   :  { %v247_v26 = vadd.f32 %v454_v24, %v246_v25 }
 0x1eb   :  { %v507_v27 = vpop.f32.mrf.mxu1 }
 0x1ec   :  { %v460_v28 = vmul.f32 -1.442695, %v247_v26 }
 0x1ed   :  { %v249_v29 = vpop.f32.mrf.mxu1 }
 0x1ee   :  { %560 = vpow2.f32 %v460_v28 }
 0x1ef   :  { %v508_v30 = vpop.f32.mrf.mxu1 }
 0x1fb   :  { %v561_v31 = vpop.eup %560 }
 0x1fc   :  { %v255_v32 = vadd.f32 1.0, %v561_v31 }
 0x1fe   :  { %562 = vrcp.f32 %v255_v32 }
 0x20b   :  { %v563_v33 = vpop.eup %562 }
 0x20c   :  { %v258_v34 = vmul.f32 %v563_v33, %v247_v26 }
 0x20e   :  { %v259_v35 = vpack.c.bf16 %v258_v34, %v258_v34 }
 0x210   :  { %518 = vmatmul.mubr.msk.bf16.vlgmr.msra.gmra.mxu0 %vm208_vm2, %v259_v35 }
 0x2d0   :  { %v336_v41 = vpop.f32.mrf.mxu0 }
 0x2d1   :  { %v337_v42 = vadd.f32 %v461_v40, %v336_v41 }
 0x2d2   :  { %v519_v43 = vpop.f32.mrf.mxu0 }
 0x2d3   :  { %v467_v44 = vmul.f32 -1.442695, %v337_v42 }
 0x2d4   :  { %v339_v45 = vpop.f32.mrf.mxu0 }
 0x2d5   :  { %564 = vpow2.f32 %v467_v44 }
 0x2d6   :  { %v520_v46 = vpop.f32.mrf.mxu0 }
 0x2e2   :  { %v565_v47 = vpop.eup %564 }
 0x2e3   :  { %v345_v48 = vadd.f32 1.0, %v565_v47 }
 0x2e5   :  { %566 = vrcp.f32 %v345_v48 }
 0x2f2   :  { %v567_v49 = vpop.eup %566 }
 0x2f3   :  { %v348_v50 = vmul.f32 %v567_v49, %v337_v42 }
 0x2f5   :  { %v349_v51 = vpack.c.bf16 %v348_v50, %v348_v50 }
 0x2f7   :  { %530 = vmatmul.mubr.msk.bf16.vlgmr.msra.gmra.mxu1 %vm208_vm2, %v349_v51 }
 0x3b7   :  { %v426_v53 = vpop.f32.mrf.mxu1 }
 0x3b8   :  { %v427_v54 = vadd.f32 %v468_v52, %v426_v53 }
 0x3b9   :  { %v531_v55 = vpop.f32.mrf.mxu1 }
 0x3ba   :  { %432 = vst [vmem:[#allocation11] sm:$0xff] %v427_v54 }
 0x3bb   :  { %v429_v56 = vpop.f32.mrf.mxu1 }
 0x3bc   :  { %679 = shalt.err (!%p676_p1)
}
 0x3bd   :  { %442 = dma.vmem_to_hbm [thread:$0]  %s440_s16, 128, %s831_s9, [#allocation4]   ;;  %v532_v57 = vpop.f32.mrf.mxu1 }
 0x3be   :  { %694 = dma.done.wait [#allocation4], 128  }
 0x3bf   :  { %695 = vsyncadd [#allocation4], 4294967168 }
 0x3c0   :  { %446 = vsyncpa [#allocation3], 1 }
 0x3c1   :  { %447 = vsyncpa [#allocation6], 1 }
 0x3c2   :  { %448 = vsyncpa [#allocation9], 1 }
 0x3c3   :  { %449 = vsyncpa [#allocation4], 1 }

</bundles_post_ra>
